<compile_context>
chip_gen: v6e
topology: v6e:2x2x1
jax: 0.10.0
libtpu: 0.0.40
codegen_flags: <defaults>
</compile_context>

<pallas_src>
import math

import jax
import jax.numpy as jnp
from jax import lax
from jax.experimental import pallas as pl
from jax.experimental.pallas import tpu as pltpu

HIDDEN = 8  # n_nodes_per_layer in the PyTorch module


def _round_up(x, m):
    return ((x + m - 1) // m) * m


def _ffnn_kernel(x_ref, w1_ref, b1_ref, w2_ref, b2_ref, w3_ref, b3_ref, o_ref):
    # x_ref : (TB, D)   natural batch-major tile (batch on sublanes)
    # w1_ref: (8, D)    PyTorch layout (out, in)
    # b1_ref: (8, 1)
    # w2_ref: (8, 8)
    # b2_ref: (8, 1)
    # w3_ref: (8, 1)    linear3 weight as a column (transposed once in wrapper)
    # b3_ref: (1, 1)
    # o_ref : (1, TB)   lane-dense output (batch on lanes)
    x = x_ref[...]

    # Layer 1 on the MXU: contract D, the minor dim of BOTH operands (Q@K^T
    # pattern), so the result is already lane-dense (hidden on sublanes,
    # batch on lanes) -- no transpose of the big x tile needed anywhere.
    z1 = lax.dot_general(
        w1_ref[...], x,
        dimension_numbers=(((1,), (1,)), ((), ())),
        preferred_element_type=jnp.float32,
    )                                                             # (8, TB)
    h1 = jnp.tanh(z1 + b1_ref[...])                               # (8, TB)

    # Layer 2 on the MXU, fully lane-dense.
    h2 = jnp.tanh(
        jnp.dot(w2_ref[...], h1, preferred_element_type=jnp.float32)
        + b2_ref[...]
    )                                                             # (8, TB)

    # Layer 3 (8 -> 1): VPU multiply + XLU cross-sublane reduce instead of a
    # 1-row MXU matmul (keeps the tiny head off the serialized MXU chain).
    out = jnp.sum(w3_ref[...] * h2, axis=0, keepdims=True) + b3_ref[...]   # (1, TB)
    o_ref[...] = out.astype(o_ref.dtype)                          # lane-dense store


def _x_tile_budget_bytes():
    """VMEM budget for the double-buffered x tiles, sized per chip."""
    budget = 16 << 20  # safe everywhere (v7x has 64 MiB physical per TC)
    try:
        cap = pltpu.get_tpu_info().vmem_capacity_bytes
        budget = min(budget, max(4 << 20, cap // 4))
    except Exception:
        pass
    return budget


def _choose_tb(B, D):
    """Pick the batch tile: big enough to amortize per-step overhead, small
    enough to fit the double-buffered x tiles in the VMEM budget, and split
    into >= ~4 grid steps (when B allows) so v7x's two TCs both get work."""
    lanes = _round_up(max(D, 1), 128)          # (TB, D) pads D up to 128 lanes in VMEM
    per_row = 2 * 4 * lanes                    # double-buffered f32 bytes per batch row
    tb_vmem = max(128, (_x_tile_budget_bytes() // per_row) // 128 * 128)
    if B < 128:
        return B                               # single full-array block (always legal)
    tb_split = max(128, _round_up(pl.cdiv(B, 4), 128))
    return min(tb_vmem, tb_split)


def ffnn_regression_forward(x, params):
    """Pallas forward pass.

    x: (B, D) float32 (natural batch-major layout, as in the nn.Module).
    params: dict with PyTorch-layout weights w{1,2,3} (out, in) and biases
            b{1,2,3} stored as (out, 1).
    Returns (B, 1) float32, matching the nn.Module output.
    """
    w1, b1 = params["w1"], params["b1"]
    w2, b2 = params["w2"], params["b2"]
    w3, b3 = params["w3"], params["b3"]

    B, D = x.shape
    assert w1.shape == (HIDDEN, D)

    TB = _choose_tb(B, D)
    grid = (pl.cdiv(B, TB),)

    # Tiny one-time relayout of the 8-element head weight (not a data copy of x).
    w3_col = w3.T                                            # (8, 1)

    # Raise the scoped VMEM limit to cover the double-buffered x tiles plus
    # activations/output, with headroom; stays well under v7x's 64 MiB.
    lanes = _round_up(max(D, 1), 128)
    x_dbuf = 2 * TB * lanes * 4
    vmem_limit = x_dbuf + x_dbuf // 2 + 6 * 8 * TB * 4 + (8 << 20)
    vmem_limit = int(min(max(vmem_limit, 16 << 20), 56 << 20))

    const = lambda i: (0, 0)  # loop-invariant (resident) weight/bias blocks

    cost = pl.CostEstimate(
        flops=2 * B * (D * HIDDEN + HIDDEN * HIDDEN + HIDDEN),
        transcendentals=2 * HIDDEN * B,
        bytes_accessed=4 * (B * D + B + HIDDEN * (D + HIDDEN + 3) + 1),
    )

    out = pl.pallas_call(
        _ffnn_kernel,
        out_shape=jax.ShapeDtypeStruct((1, B), jnp.float32),
        grid=grid,
        in_specs=[
            pl.BlockSpec((TB, D), lambda i: (i, 0)),         # natural x tile
            pl.BlockSpec((HIDDEN, D), const),
            pl.BlockSpec((HIDDEN, 1), const),
            pl.BlockSpec((HIDDEN, HIDDEN), const),
            pl.BlockSpec((HIDDEN, 1), const),
            pl.BlockSpec((HIDDEN, 1), const),
            pl.BlockSpec((1, 1), const),
        ],
        out_specs=pl.BlockSpec((1, TB), lambda i: (0, i)),    # lane-dense output row
        compiler_params=pltpu.CompilerParams(
            dimension_semantics=("parallel",),                # batch splits across TCs (v7x)
            vmem_limit_bytes=vmem_limit,
        ),
        cost_estimate=cost,
    )(x, w1, b1, w2, b2, w3_col, b3)

    # (1, B) lane-dense -> (B, 1) batch-major like the nn.Module (B*4 bytes).
    return out.reshape(B, 1)


def init_params(key, input_dim):
    """Init matching nn.Linear's default U(-1/sqrt(fan_in), 1/sqrt(fan_in))."""
    def linear(key, fan_in, fan_out):
        kw, kb = jax.random.split(key)
        bound = 1.0 / math.sqrt(fan_in)
        # PyTorch layout: weight (out, in); bias stored as (out, 1) column.
        w = jax.random.uniform(kw, (fan_out, fan_in), jnp.float32, -bound, bound)
        b = jax.random.uniform(kb, (fan_out, 1), jnp.float32, -bound, bound)
        return w, b

    k1, k2, k3 = jax.random.split(key, 3)
    w1, b1 = linear(k1, input_dim, HIDDEN)
    w2, b2 = linear(k2, HIDDEN, HIDDEN)
    w3, b3 = linear(k3, HIDDEN, 1)
    return {"w1": w1, "b1": b1, "w2": w2, "b2": b2, "w3": w3, "b3": b3}


def reference_forward(x, params):
    h1 = jnp.tanh(x @ params["w1"].T + params["b1"][:, 0])
    h2 = jnp.tanh(h1 @ params["w2"].T + params["b2"][:, 0])
    return h2 @ params["w3"].T + params["b3"][:, 0]


if __name__ == "__main__":
    key = jax.random.PRNGKey(0)
    k_x, k_x2, k_p = jax.random.split(key, 3)

    batch, input_dim = 8, 16
    params = init_params(k_p, input_dim)

    # Small check (single full-array block, grid of 1).
    x = jax.random.normal(k_x, (batch, input_dim), jnp.float32)
    out = jax.block_until_ready(ffnn_regression_forward(x, params))
    ref = reference_forward(x, params)
    assert out.shape == (batch, 1)
    assert jnp.allclose(out, ref, atol=1e-5, rtol=1e-5), \
        float(jnp.max(jnp.abs(out - ref)))

    # Multi-tile + ragged-tail path (TB=128, grid=3, last block partial, no padded copy).
    batch2 = 300
    x2 = jax.random.normal(k_x2, (batch2, input_dim), jnp.float32)
    out2 = jax.block_until_ready(ffnn_regression_forward(x2, params))
    ref2 = reference_forward(x2, params)
    assert out2.shape == (batch2, 1)
    assert jnp.allclose(out2, ref2, atol=1e-5, rtol=1e-5), \
        float(jnp.max(jnp.abs(out2 - ref2)))

    print("KERNEL_OK")
</pallas_src>

<mosaic_0001>
module attributes {stable_mosaic.version = 11 : i64} {
  func.func @_ffnn_kernel(%arg0: i32, %arg1: memref<8x16xf32, #tpu.memory_space<vmem>>, %arg2: memref<8x16xf32, #tpu.memory_space<vmem>>, %arg3: memref<8x1xf32, #tpu.memory_space<vmem>>, %arg4: memref<8x8xf32, #tpu.memory_space<vmem>>, %arg5: memref<8x1xf32, #tpu.memory_space<vmem>>, %arg6: memref<8x1xf32, #tpu.memory_space<vmem>>, %arg7: memref<1x1xf32, #tpu.memory_space<vmem>>, %arg8: memref<1x8xf32, #tpu.memory_space<vmem>>) attributes {dimension_semantics = [#tpu.dimension_semantics<parallel>], iteration_bounds = array<i64: 1>, scalar_prefetch = 0 : i64, scratch_operands = 0 : i64, tpu.core_type = #tpu.core_type<tc>, window_params = [{transform_indices = @transform_0, window_bounds = array<i64: 8, 16>}, {pipeline_mode = #tpu.pipeline_mode<synchronous>, transform_indices = @transform_1, window_bounds = array<i64: 8, 16>}, {pipeline_mode = #tpu.pipeline_mode<synchronous>, transform_indices = @transform_2, window_bounds = array<i64: 8, 1>}, {pipeline_mode = #tpu.pipeline_mode<synchronous>, transform_indices = @transform_3, window_bounds = array<i64: 8, 8>}, {pipeline_mode = #tpu.pipeline_mode<synchronous>, transform_indices = @transform_4, window_bounds = array<i64: 8, 1>}, {pipeline_mode = #tpu.pipeline_mode<synchronous>, transform_indices = @transform_5, window_bounds = array<i64: 8, 1>}, {pipeline_mode = #tpu.pipeline_mode<synchronous>, transform_indices = @transform_6, window_bounds = array<i64: 1, 1>}, {transform_indices = @transform_7, window_bounds = array<i64: 1, 8>}]} {
    %c0 = arith.constant 0 : index
    %c0_0 = arith.constant 0 : index
    %0 = vector.load %arg1[%c0, %c0_0] : memref<8x16xf32, #tpu.memory_space<vmem>>, vector<8x16xf32>
    %c0_1 = arith.constant 0 : index
    %c0_2 = arith.constant 0 : index
    %1 = vector.load %arg2[%c0_1, %c0_2] : memref<8x16xf32, #tpu.memory_space<vmem>>, vector<8x16xf32>
    %cst = arith.constant dense<0.000000e+00> : vector<8x8xf32>
    %2 = tpu.matmul %1, %0, %cst {dimension_numbers = #tpu.dot_dimension_numbers<[1], [1], [0], [0], [0, 0, 1, 0], [], []>} : vector<8x16xf32>, vector<8x16xf32>, vector<8x8xf32> -> vector<8x8xf32>
    %c0_3 = arith.constant 0 : index
    %c0_4 = arith.constant 0 : index
    %3 = vector.load %arg3[%c0_3, %c0_4] : memref<8x1xf32, #tpu.memory_space<vmem>>, vector<8x1xf32>
    %4 = vector.broadcast %3 : vector<8x1xf32> to vector<8x8xf32>
    %5 = arith.addf %2, %4 : vector<8x8xf32>
    %6 = math.tanh %5 : vector<8x8xf32>
    %c0_5 = arith.constant 0 : index
    %c0_6 = arith.constant 0 : index
    %7 = vector.load %arg4[%c0_5, %c0_6] : memref<8x8xf32, #tpu.memory_space<vmem>>, vector<8x8xf32>
    %cst_7 = arith.constant dense<0.000000e+00> : vector<8x8xf32>
    %8 = tpu.matmul %7, %6, %cst_7 {dimension_numbers = #tpu.dot_dimension_numbers<[1], [0], [0], [1], [0, 0, 1, 1], [], []>} : vector<8x8xf32>, vector<8x8xf32>, vector<8x8xf32> -> vector<8x8xf32>
    %c0_8 = arith.constant 0 : index
    %c0_9 = arith.constant 0 : index
    %9 = vector.load %arg5[%c0_8, %c0_9] : memref<8x1xf32, #tpu.memory_space<vmem>>, vector<8x1xf32>
    %10 = vector.broadcast %9 : vector<8x1xf32> to vector<8x8xf32>
    %11 = arith.addf %8, %10 : vector<8x8xf32>
    %12 = math.tanh %11 : vector<8x8xf32>
    %c0_10 = arith.constant 0 : index
    %c0_11 = arith.constant 0 : index
    %13 = vector.load %arg6[%c0_10, %c0_11] : memref<8x1xf32, #tpu.memory_space<vmem>>, vector<8x1xf32>
    %14 = vector.broadcast %13 : vector<8x1xf32> to vector<8x8xf32>
    %15 = arith.mulf %14, %12 : vector<8x8xf32>
    %cst_12 = arith.constant dense<0.000000e+00> : vector<8xf32>
    %16 = vector.multi_reduction <add>, %15, %cst_12 [0] : vector<8x8xf32> to vector<8xf32>
    %17 = vector.shape_cast %16 : vector<8xf32> to vector<1x8xf32>
    %c0_13 = arith.constant 0 : index
    %c0_14 = arith.constant 0 : index
    %18 = vector.load %arg7[%c0_13, %c0_14] : memref<1x1xf32, #tpu.memory_space<vmem>>, vector<1x1xf32>
    %19 = vector.broadcast %18 : vector<1x1xf32> to vector<1x8xf32>
    %20 = arith.addf %17, %19 : vector<1x8xf32>
    %c0_15 = arith.constant 0 : index
    %c0_16 = arith.constant 0 : index
    %21 = vector.load %arg8[%c0_15, %c0_16] : memref<1x8xf32, #tpu.memory_space<vmem>>, vector<1x8xf32>
    tpu.vector_store %arg8[%c0_15, %c0_16], %20 {strides = array<i32>} : memref<1x8xf32, #tpu.memory_space<vmem>>, vector<1x8xf32>,
    return
  }
  func.func @transform_0(%arg0: i32) -> (i32, i32) {
    %c0_i32 = arith.constant 0 : i32
    %c0_i32_0 = arith.constant 0 : i32
    return %arg0, %c0_i32 : i32, i32
  }
  func.func @transform_1(%arg0: i32) -> (i32, i32) {
    %c0_i32 = arith.constant 0 : i32
    %c0_i32_0 = arith.constant 0 : i32
    %c0_i32_1 = arith.constant 0 : i32
    return %c0_i32, %c0_i32_0 : i32, i32
  }
  func.func @transform_2(%arg0: i32) -> (i32, i32) {
    %c0_i32 = arith.constant 0 : i32
    %c0_i32_0 = arith.constant 0 : i32
    %c0_i32_1 = arith.constant 0 : i32
    return %c0_i32, %c0_i32_0 : i32, i32
  }
  func.func @transform_3(%arg0: i32) -> (i32, i32) {
    %c0_i32 = arith.constant 0 : i32
    %c0_i32_0 = arith.constant 0 : i32
    %c0_i32_1 = arith.constant 0 : i32
    return %c0_i32, %c0_i32_0 : i32, i32
  }
  func.func @transform_4(%arg0: i32) -> (i32, i32) {
    %c0_i32 = arith.constant 0 : i32
    %c0_i32_0 = arith.constant 0 : i32
    %c0_i32_1 = arith.constant 0 : i32
    return %c0_i32, %c0_i32_0 : i32, i32
  }
  func.func @transform_5(%arg0: i32) -> (i32, i32) {
    %c0_i32 = arith.constant 0 : i32
    %c0_i32_0 = arith.constant 0 : i32
    %c0_i32_1 = arith.constant 0 : i32
    return %c0_i32, %c0_i32_0 : i32, i32
  }
  func.func @transform_6(%arg0: i32) -> (i32, i32) {
    %c0_i32 = arith.constant 0 : i32
    %c0_i32_0 = arith.constant 0 : i32
    %c0_i32_1 = arith.constant 0 : i32
    return %c0_i32, %c0_i32_0 : i32, i32
  }
  func.func @transform_7(%arg0: i32) -> (i32, i32) {
    %c0_i32 = arith.constant 0 : i32
    %c0_i32_0 = arith.constant 0 : i32
    return %c0_i32, %arg0 : i32, i32
  }
}

</mosaic_0001>

<bundles_post_ra>
// kernel: tpu_custom_call.1
= control target key start
LH: loop header
LB: loop body
LE: loop exit
PB: predicated region body
PF: predicated region fallthrough
CT: control target
= control target key end

     0   :  { %s357_s0 = inlined_call_operand.vmem [shape: f32[8,16], index: 0, kind: input, shape index: {}]   ;;  %s358_s1 = inlined_call_operand.vmem [shape: f32[8,16], index: 1, kind: input, shape index: {}]   ;;  %s359_s2 = inlined_call_operand.vmem [shape: f32[8,1], index: 2, kind: input, shape index: {}]   ;;  %s360_s3 = inlined_call_operand.vmem [shape: f32[8,8], index: 3, kind: input, shape index: {}]   ;;  %s361_s4 = inlined_call_operand.vmem [shape: f32[8,1], index: 4, kind: input, shape index: {}]   ;;  %s362_s5 = inlined_call_operand.vmem [shape: f32[8,1], index: 5, kind: input, shape index: {}]   ;;  %s363_s6 = inlined_call_operand.<no memory space> [shape: f32[1,1], index: 6, kind: input, shape index: {}]   ;;  %s364_s7 = inlined_call_operand.hbm [shape: f32[1,8], index: 7, kind: output, shape index: {}]  }
   0x1   :  { %v12_v0 = vstv %s363_s6 }
   0x2   :  { %13 = vst [vmem:[#allocation2] sm:$0x1] %v12_v0 }
   0x3   :  { %v29_v1 = vld [vmem:[%s357_s0] sm:$0xff]  ;;  %vm37_vm0 = vcmask 130048   ;;  %v287_v2 = vmov 0.0   ;;  %vm288_vm1 = vmmov 0  }
   0x4   :  { %245 = vmatprep.subr.mxu0 %v287_v2  ;;  %247 = vmatprep.mubr.msk.f32.mxu0 %vm288_vm1, %v287_v2  ;;  %v31_v3 = vld [vmem:[%s359_s2] sm:$0xff] }
   0x5   :  { %14 = vsyncpa [#allocation4], 0  ;;  %246 = vmatpush3.xpose.msk.msra.mxu0 %vm37_vm0, %v29_v1  ;;  %v30_v4 = vld [vmem:[%s358_s1] sm:$0xff]  ;;  %v289_v5 = vmov 0   ;;  %250 = vmatprep.subr.mxu1 %v287_v2  ;;  %vm122_vm2 = vcmask 64512   ;;  %v217_v22 = vlaneseq  ;;  %vm222_vm3 = vcmask 57344  }
   0x6   :  { %259 = vset.pattern.permute.xlu0 %v289_v5  ;;  %v116_v6 = vld [vmem:[%s361_s4] sm:$0xff]  ;;  %252 = vmatprep.mubr.msk.f32.mxu1 %vm288_vm1, %v287_v2 }
   0x7   :  { %34 = vperm.xlu0 %259, %v31_v3   ;;  %260 = vset.pattern.permute.xlu1 %v289_v5  ;;  %v197_v7 = vld [vmem:[%s362_s5] sm:$0xff]  ;;  %v218_v26 = vshrl.u32 %v217_v22, 7 }
   0x8   :  { %248 = vmatmul.mubr.msk.f32.vlgmr.msra.gmra.mxu0 %vm37_vm0, %v30_v4  ;;  %200 = vperm.xlu1 %260, %v197_v7   ;;  %v115_v13 = vld [vmem:[%s360_s3] sm:$0xff]  ;;  %s290_s3 = smov [#allocation3]  }
   0x9   :  { %v211_v8 = vld [vmem:[#allocation2] sm:$0x1]  ;;  %v219_v29 = vsub.s32 0, %v218_v26  ;;  %s230_s4 = sshll.u32 %s290_s3, 4  ;;  %s231_s4 = int_to_ptr.vmem [resolvable:$true] %s230_s4 }
   0xa   :  { %s265_s5 = scalar_lea.vmem %s231_s4, 16  ;;  %s269_s11 = scalar_lea.vmem %s231_s4, 32 }
   0xb   :  { %119 = vperm.xlu0 %259, %v116_v6   ;;  %p266_p0 = scmp.ne.s32.totalorder %s231_s4, %s265_s5  ;;  %p270_p1 = scmp.lt.s32.totalorder %s231_s4, %s231_s4 }
   0xc   :  { %214 = vperm.xlu1 %260, %v211_v8   ;;  %p271_p2 = scmp.lt.s32.totalorder %s269_s11, %s265_s5 }
   0xe   :  { %p272_p3 = por %p271_p2, %p270_p1 }
  0x10   :  { %p273_p4 = pnand %p272_p3, %p266_p0 }
  0x82   :  { %v35_v9 = vpop.permute.xlu0 %34 }
  0x83   :  { %v201_v20 = vpop.permute.xlu1 %200 }
  0x86   :  { %v120_v15 = vpop.permute.xlu0 %119 }
  0x87   :  { %v215_v30 = vpop.permute.xlu1 %214 }
  0x88   :  { %v220_v33 = vrot.slane %v215_v30, %v219_v29 }
  0xc8   :  { %v110_v10 = vpop.f32.mrf.mxu0 }
  0xc9   :  { %v111_v11 = vadd.f32 %v110_v10, %v35_v9 }
  0xca   :  { %v249_v12 = vpop.f32.mrf.mxu0 }
  0xcb   :  { %261 = vtanh.f32 %v111_v11 }
  0xd8   :  { %v262_v14 = vpop.eup %261 }
  0xd9   :  { %251 = vmatpush3.msra.mxu1 %v262_v14 }
  0xda   :  { %253 = vmatmul.mubr.msk.f32.vlgmr.msra.gmra.mxu1 %vm122_vm2, %v115_v13 }
 0x19a   :  { %v192_v16 = vpop.f32.mrf.mxu1 }
 0x19b   :  { %v193_v17 = vadd.f32 %v192_v16, %v120_v15 }
 0x19c   :  { %v254_v18 = vpop.f32.mrf.mxu1 }
 0x19d   :  { %263 = vtanh.f32 %v193_v17 }
 0x1aa   :  { %v264_v19 = vpop.eup %263 }
 0x1ab   :  { %v203_v21 = vmul.f32 %v264_v19, %v201_v20 }
 0x1ad   :  { %v204_v23 = vsel %vm122_vm2, %v203_v21, 0.0 }
 0x1ae   :  { %v205_v24 = vrot.slane %v204_v23, 4 }
 0x1b0   :  { %v206_v25 = vadd.f32 %v205_v24, %v204_v23 }
 0x1b2   :  { %v207_v27 = vrot.slane %v206_v25, 2 }
 0x1b4   :  { %v208_v28 = vadd.f32 %v207_v27, %v206_v25 }
 0x1b6   :  { %v209_v31 = vrot.slane %v208_v28, 1 }
 0x1b8   :  { %v210_v32 = vadd.f32 %v209_v31, %v208_v28 }
 0x1ba   :  { %v221_v34 = vadd.f32 %v220_v33, %v210_v32 }
 0x1bc   :  { %223 = vst.msk [vmem:[#allocation3] sm:$0x1] %vm222_vm3, %v221_v34 }
 0x1bd   :  { %276 = shalt.err (!%p273_p4)
}
 0x1be   :  { %233 = dma.vmem_to_hbm [thread:$0]  %s231_s4, 16, %s364_s7, [#allocation4]  }
 0x1bf   :  { %285 = dma.done.wait [#allocation4], 16  }
 0x1c0   :  { %286 = vsyncadd [#allocation4], 4294967280 }
 0x1c1   :  { %237 = vsyncpa [#allocation4], 1 }

</bundles_post_ra>
